<compile_context>
chip_gen: v5e
topology: v5e:2x2
jax: 0.10.0
libtpu: 0.0.40
codegen_flags: <defaults>
</compile_context>

<pallas_src>
import functools

import jax
import jax.numpy as jnp
from jax.experimental import pallas as pl
from jax.experimental.pallas import tpu as pltpu

_LANE = 128      # lane width (last dim)
_SUBLANE = 8     # sublane width (second-to-last dim)
_MAX_TB = 256    # max batch-row tile (fills the 256x256 MXU on v6e/v7x, fine on v5e)


def _round_up(x, m):
    return ((x + m - 1) // m) * m


def _cdiv(a, b):
    return -(-a // b)


def _pad_dim(d):
    # Lane-dense + MXU-shaped feature padding: 128 for small dims, 256-aligned above
    # 128 (v6e/v7x MXUs are 2x256x256; 128-multiples would quarter-fill them).
    if d <= _LANE:
        return _LANE
    return _round_up(d, 2 * _LANE)


def _batch_tiling(B):
    """Choose (padded batch Bp, row tile TB). TB divides Bp; grid = Bp // TB."""
    if B <= _SUBLANE:
        return B, B                     # single full-array block, no padding at all
    n_tiles = max(2, _cdiv(B, _MAX_TB))  # >=2 grid steps so both v7x TCs get work
    TB = _round_up(_cdiv(B, n_tiles), _SUBLANE)
    return n_tiles * TB, TB


def _const_spec(shape):
    """Spec for a weight/threshold block that is identical at every grid step.
    Constant blocks are fetched once; Buffered(1) drops the useless second buffer."""
    try:
        return pl.BlockSpec(shape, lambda i: (0, 0), pipeline_mode=pl.Buffered(1))
    except Exception:  # fallback if this jax build lacks pipeline_mode / Buffered(1)
        return pl.BlockSpec(shape, lambda i: (0, 0))


def _fused_net_kernel(x_ref, *refs, n_layers):
    """Fused forward of the whole net for one batch tile.

    refs = (w0, thr0, w1, thr1, ..., w_{L-1}, thr_{L-1}, o_ref)
    Static Python unroll over layers: each layer is one MXU matmul (f32 accumulate)
    plus a threshold compare; intermediates stay VMEM/vreg resident, only the final
    classifier spikes hit HBM.
    """
    o_ref = refs[2 * n_layers]
    h = x_ref[...]                                    # (TB, Din) f32, real-valued input
    for l in range(n_layers):
        w = refs[2 * l][...]                          # layer 0: f32; others: bf16
        thr = refs[2 * l + 1][...]                    # (1, Dout_pad) f32 = threshold - b
        z = jnp.dot(h, w, preferred_element_type=jnp.float32)
        s = (z > thr).astype(jnp.float32)             # LIF spike on fresh state
        if l + 1 < n_layers:
            h = s.astype(jnp.bfloat16)                # {0,1} -> bf16 is lossless
        else:
            o_ref[...] = s                            # only final output is written


def prepare_params(params, threshold=1.0):
    """One-time preprocessing (init time, NOT per call):
      * zero-pad each layer to MXU-friendly (K_prev_pad, Dout_pad) shapes,
      * fold the bias into a per-column f32 threshold  thr = threshold - b,
      * cast hidden/classifier weights to bf16 (inputs there are exact {0,1} spikes),
        keep layer 0 in f32 (real-valued input).
    Padded weight rows/cols are zero and padded thr columns equal `threshold`, so
    padded lanes never influence the real (sliced) outputs."""
    prepped = []
    in_dim = params[0][0].shape[0]          # true input width of layer 0 (kept unpadded)
    for l, (w, b) in enumerate(params):
        din, dout = w.shape
        dout_pad = _pad_dim(dout)
        w_dtype = jnp.float32 if l == 0 else jnp.bfloat16
        w_p = jnp.zeros((in_dim, dout_pad), w_dtype).at[:din, :dout].set(
            w.astype(w_dtype))
        thr = jnp.full((1, dout_pad), float(threshold), jnp.float32)
        thr = thr.at[:, :dout].set(jnp.float32(threshold) - b.astype(jnp.float32))
        prepped.append((w_p, thr))
        in_dim = dout_pad
    return prepped


def _vmem_bytes(TB, Din, prepped):
    """Rough VMEM budget: single-buffered weights/thresholds + double-buffered
    input/output tiles + live intermediate activations."""
    n = 2 * TB * Din * 4                               # input tile, double-buffered
    widest = Din
    for (w, thr) in prepped:
        n += w.size * w.dtype.itemsize + thr.size * 4  # constant blocks, single buffer
        widest = max(widest, w.shape[1])
    n += 2 * TB * prepped[-1][0].shape[1] * 4          # output tile, double-buffered
    n += 2 * TB * widest * 4                           # live f32/bf16 intermediates
    return n


def net_forward(x, prepped, nclass):
    """Full Net forward (chain of Blocks + last Block's Classifier) as one kernel."""
    B, Din = x.shape
    n_layers = len(prepped)
    Dout_pad = prepped[-1][0].shape[1]

    Bp, TB = _batch_tiling(B)
    # No feature padding of x (first layer block spans the full input width); batch is
    # padded only when the tile count requires it.
    x_in = x if Bp == B else jnp.zeros((Bp, Din), x.dtype).at[:B].set(x)

    in_specs = [pl.BlockSpec((TB, Din), lambda i: (i, 0))]
    flat_params = []
    for (w_p, thr_p) in prepped:
        in_specs.append(_const_spec(w_p.shape))        # whole weight resident in VMEM
        in_specs.append(_const_spec(thr_p.shape))
        flat_params.extend([w_p, thr_p])

    kernel = functools.partial(_fused_net_kernel, n_layers=n_layers)

    vmem_limit = int(min(64 * 1024 * 1024,
                         max(32 * 1024 * 1024, 2 * _vmem_bytes(TB, Din, prepped))))

    out_pad = pl.pallas_call(
        kernel,
        out_shape=jax.ShapeDtypeStruct((Bp, Dout_pad), jnp.float32),
        grid=(Bp // TB,),
        in_specs=in_specs,
        out_specs=pl.BlockSpec((TB, Dout_pad), lambda i: (i, 0)),
        compiler_params=pltpu.CompilerParams(
            dimension_semantics=("parallel",),          # batch tiles are independent
            vmem_limit_bytes=vmem_limit),
    )(x_in, *flat_params)

    # Drop batch padding and padded classifier lanes.
    return out_pad[:B, :nclass]


def init_params(key, dims, nclass):
    """Deterministic PyTorch-style init for every Block Linear and the final Classifier.
    Weights are stored transposed as (in_features, out_features)."""
    params = []
    layer_shapes = [(dims[d], dims[d + 1]) for d in range(len(dims) - 1)]
    layer_shapes.append((dims[-1], nclass))
    for (din, dout) in layer_shapes:
        key, kw, kb = jax.random.split(key, 3)
        bound = 1.0 / (din ** 0.5)
        w = jax.random.uniform(kw, (din, dout), jnp.float32, -bound, bound)
        b = jax.random.uniform(kb, (1, dout), jnp.float32, -bound, bound)
        params.append((w, b))
    return params


def net_forward_ref(x, prepped, nclass):
    # Pure-JAX reference that mirrors the kernel math exactly (same padded/bf16 params,
    # same folded thresholds); matches the PyTorch forward on a fresh net up to float
    # reassociation.
    h = x
    for (w, thr) in prepped:
        z = jnp.dot(h.astype(w.dtype), w, preferred_element_type=jnp.float32)
        h = (z > thr).astype(jnp.float32)
    return h[:, :nclass]


if __name__ == "__main__":
    # Small shapes: dims = [32, 64, 48], nclass = 10, batch = 8
    dims = (32, 64, 48)
    nclass = 10
    batch = 8
    threshold = 1.0  # decay / vmax do not affect the forward pass on a fresh net

    key = jax.random.PRNGKey(0)
    key, kx = jax.random.split(key)
    x = jax.random.normal(kx, (batch, dims[0]), jnp.float32) * 2.0

    params = init_params(key, dims, nclass)
    prepped = prepare_params(params, threshold=threshold)   # once, outside the hot path

    fwd = jax.jit(lambda xx: net_forward(xx, prepped, nclass=nclass))
    out = jax.block_until_ready(fwd(x))

    ref = net_forward_ref(x, prepped, nclass)
    assert out.shape == (batch, nclass), out.shape
    assert out.dtype == jnp.float32
    assert bool(jnp.all(out == ref)), "Pallas output mismatch vs reference"

    # TODO(synk): backward/DFA (dfa_backward_hook, SFMatrix feedback, fit) and
    # multi-timestep LIF membrane state / reset are training-time / stateful features
    # with no forward-pass Pallas equivalent.
    print("KERNEL_OK")
</pallas_src>

<mosaic_0001>
module attributes {stable_mosaic.version = 11 : i64} {
  func.func @_fused_net_kernel(%arg0: i32, %arg1: memref<8x32xf32, #tpu.memory_space<vmem>>, %arg2: memref<32x128xf32, #tpu.memory_space<vmem>>, %arg3: memref<1x128xf32, #tpu.memory_space<vmem>>, %arg4: memref<128x128xbf16, #tpu.memory_space<vmem>>, %arg5: memref<1x128xf32, #tpu.memory_space<vmem>>, %arg6: memref<128x128xbf16, #tpu.memory_space<vmem>>, %arg7: memref<1x128xf32, #tpu.memory_space<vmem>>, %arg8: memref<8x128xf32, #tpu.memory_space<vmem>>) attributes {dimension_semantics = [#tpu.dimension_semantics<parallel>], iteration_bounds = array<i64: 1>, scalar_prefetch = 0 : i64, scratch_operands = 0 : i64, tpu.core_type = #tpu.core_type<tc>, window_params = [{transform_indices = @transform_0, window_bounds = array<i64: 8, 32>}, {pipeline_mode = #tpu.pipeline_mode<synchronous>, transform_indices = @transform_1, window_bounds = array<i64: 32, 128>}, {pipeline_mode = #tpu.pipeline_mode<synchronous>, transform_indices = @transform_2, window_bounds = array<i64: 1, 128>}, {pipeline_mode = #tpu.pipeline_mode<synchronous>, transform_indices = @transform_3, window_bounds = array<i64: 128, 128>}, {pipeline_mode = #tpu.pipeline_mode<synchronous>, transform_indices = @transform_4, window_bounds = array<i64: 1, 128>}, {pipeline_mode = #tpu.pipeline_mode<synchronous>, transform_indices = @transform_5, window_bounds = array<i64: 128, 128>}, {pipeline_mode = #tpu.pipeline_mode<synchronous>, transform_indices = @transform_6, window_bounds = array<i64: 1, 128>}, {transform_indices = @transform_7, window_bounds = array<i64: 8, 128>}]} {
    %c0 = arith.constant 0 : index
    %c0_0 = arith.constant 0 : index
    %0 = vector.load %arg1[%c0, %c0_0] : memref<8x32xf32, #tpu.memory_space<vmem>>, vector<8x32xf32>
    %c0_1 = arith.constant 0 : index
    %c0_2 = arith.constant 0 : index
    %1 = vector.load %arg2[%c0_1, %c0_2] : memref<32x128xf32, #tpu.memory_space<vmem>>, vector<32x128xf32>
    %c0_3 = arith.constant 0 : index
    %c0_4 = arith.constant 0 : index
    %2 = vector.load %arg3[%c0_3, %c0_4] : memref<1x128xf32, #tpu.memory_space<vmem>>, vector<1x128xf32>
    %cst = arith.constant dense<0.000000e+00> : vector<8x128xf32>
    %3 = tpu.matmul %0, %1, %cst {dimension_numbers = #tpu.dot_dimension_numbers<[1], [0], [0], [1], [0, 0, 1, 1], [], []>} : vector<8x32xf32>, vector<32x128xf32>, vector<8x128xf32> -> vector<8x128xf32>
    %4 = vector.broadcast %2 : vector<1x128xf32> to vector<8x128xf32>
    %5 = arith.cmpf ogt, %3, %4 : vector<8x128xf32>
    %6 = arith.extui %5 : vector<8x128xi1> to vector<8x128xi32>
    %7 = arith.sitofp %6 : vector<8x128xi32> to vector<8x128xf32>
    %8 = arith.truncf %7 : vector<8x128xf32> to vector<8x128xbf16>
    %c0_5 = arith.constant 0 : index
    %c0_6 = arith.constant 0 : index
    %9 = vector.load %arg4[%c0_5, %c0_6] : memref<128x128xbf16, #tpu.memory_space<vmem>>, vector<128x128xbf16>
    %c0_7 = arith.constant 0 : index
    %c0_8 = arith.constant 0 : index
    %10 = vector.load %arg5[%c0_7, %c0_8] : memref<1x128xf32, #tpu.memory_space<vmem>>, vector<1x128xf32>
    %cst_9 = arith.constant dense<0.000000e+00> : vector<8x128xf32>
    %11 = tpu.matmul %8, %9, %cst_9 {dimension_numbers = #tpu.dot_dimension_numbers<[1], [0], [0], [1], [0, 0, 1, 1], [], []>} : vector<8x128xbf16>, vector<128x128xbf16>, vector<8x128xf32> -> vector<8x128xf32>
    %12 = vector.broadcast %10 : vector<1x128xf32> to vector<8x128xf32>
    %13 = arith.cmpf ogt, %11, %12 : vector<8x128xf32>
    %14 = arith.extui %13 : vector<8x128xi1> to vector<8x128xi32>
    %15 = arith.sitofp %14 : vector<8x128xi32> to vector<8x128xf32>
    %16 = arith.truncf %15 : vector<8x128xf32> to vector<8x128xbf16>
    %c0_10 = arith.constant 0 : index
    %c0_11 = arith.constant 0 : index
    %17 = vector.load %arg6[%c0_10, %c0_11] : memref<128x128xbf16, #tpu.memory_space<vmem>>, vector<128x128xbf16>
    %c0_12 = arith.constant 0 : index
    %c0_13 = arith.constant 0 : index
    %18 = vector.load %arg7[%c0_12, %c0_13] : memref<1x128xf32, #tpu.memory_space<vmem>>, vector<1x128xf32>
    %cst_14 = arith.constant dense<0.000000e+00> : vector<8x128xf32>
    %19 = tpu.matmul %16, %17, %cst_14 {dimension_numbers = #tpu.dot_dimension_numbers<[1], [0], [0], [1], [0, 0, 1, 1], [], []>} : vector<8x128xbf16>, vector<128x128xbf16>, vector<8x128xf32> -> vector<8x128xf32>
    %20 = vector.broadcast %18 : vector<1x128xf32> to vector<8x128xf32>
    %21 = arith.cmpf ogt, %19, %20 : vector<8x128xf32>
    %22 = arith.extui %21 : vector<8x128xi1> to vector<8x128xi32>
    %23 = arith.sitofp %22 : vector<8x128xi32> to vector<8x128xf32>
    %c0_15 = arith.constant 0 : index
    %c0_16 = arith.constant 0 : index
    %24 = vector.load %arg8[%c0_15, %c0_16] : memref<8x128xf32, #tpu.memory_space<vmem>>, vector<8x128xf32>
    tpu.vector_store %arg8[%c0_15, %c0_16], %23 {strides = array<i32>} : memref<8x128xf32, #tpu.memory_space<vmem>>, vector<8x128xf32>,
    return
  }
  func.func @transform_0(%arg0: i32) -> (i32, i32) {
    %c0_i32 = arith.constant 0 : i32
    %c0_i32_0 = arith.constant 0 : i32
    return %arg0, %c0_i32 : i32, i32
  }
  func.func @transform_1(%arg0: i32) -> (i32, i32) {
    %c0_i32 = arith.constant 0 : i32
    %c0_i32_0 = arith.constant 0 : i32
    %c0_i32_1 = arith.constant 0 : i32
    return %c0_i32, %c0_i32_0 : i32, i32
  }
  func.func @transform_2(%arg0: i32) -> (i32, i32) {
    %c0_i32 = arith.constant 0 : i32
    %c0_i32_0 = arith.constant 0 : i32
    %c0_i32_1 = arith.constant 0 : i32
    return %c0_i32, %c0_i32_0 : i32, i32
  }
  func.func @transform_3(%arg0: i32) -> (i32, i32) {
    %c0_i32 = arith.constant 0 : i32
    %c0_i32_0 = arith.constant 0 : i32
    %c0_i32_1 = arith.constant 0 : i32
    return %c0_i32, %c0_i32_0 : i32, i32
  }
  func.func @transform_4(%arg0: i32) -> (i32, i32) {
    %c0_i32 = arith.constant 0 : i32
    %c0_i32_0 = arith.constant 0 : i32
    %c0_i32_1 = arith.constant 0 : i32
    return %c0_i32, %c0_i32_0 : i32, i32
  }
  func.func @transform_5(%arg0: i32) -> (i32, i32) {
    %c0_i32 = arith.constant 0 : i32
    %c0_i32_0 = arith.constant 0 : i32
    %c0_i32_1 = arith.constant 0 : i32
    return %c0_i32, %c0_i32_0 : i32, i32
  }
  func.func @transform_6(%arg0: i32) -> (i32, i32) {
    %c0_i32 = arith.constant 0 : i32
    %c0_i32_0 = arith.constant 0 : i32
    %c0_i32_1 = arith.constant 0 : i32
    return %c0_i32, %c0_i32_0 : i32, i32
  }
  func.func @transform_7(%arg0: i32) -> (i32, i32) {
    %c0_i32 = arith.constant 0 : i32
    %c0_i32_0 = arith.constant 0 : i32
    return %arg0, %c0_i32 : i32, i32
  }
}

</mosaic_0001>

<bundles_post_ra>
// kernel: _lambda_.1
= control target key start
LH: loop header
LB: loop body
LE: loop exit
PB: predicated region body
PF: predicated region fallthrough
CT: control target
= control target key end

     0   :  { %12 = vsyncpa [#allocation3], 0  ;;  %s658_s0 = inlined_call_operand.hbm [shape: f32[8,32], index: 0, kind: input, shape index: {}]   ;;  %s659_s1 = inlined_call_operand.hbm [shape: f32[32,128], index: 1, kind: input, shape index: {}]   ;;  %s660_s2 = inlined_call_operand.hbm [shape: f32[1,128], index: 2, kind: input, shape index: {}]   ;;  %s661_s3 = inlined_call_operand.hbm [shape: bf16[128,128], index: 3, kind: input, shape index: {}]   ;;  %s662_s4 = inlined_call_operand.vmem [shape: f32[1,128], index: 4, kind: input, shape index: {}]   ;;  %s663_s5 = inlined_call_operand.hbm [shape: bf16[128,128], index: 5, kind: input, shape index: {}]   ;;  %s664_s6 = inlined_call_operand.vmem [shape: f32[1,128], index: 6, kind: input, shape index: {}]   ;;  %s665_s7 = inlined_call_operand.hbm [shape: f32[8,128], index: 7, kind: output, shape index: {}]  }
   0x1   :  { %13 = vsyncpa [#allocation6], 0 }
   0x2   :  { %14 = vsyncpa [#allocation9], 0  ;;  %s31_s26 = sshll.u32 %s659_s1, 4  ;;  %s32_s26 = int_to_ptr.hbm [resolvable:$true] %s31_s26 }
   0x3   :  { %15 = vsyncpa [#allocation4], 0  ;;  %s582_s27 = smov [#allocation5]   ;;  %s55_s8 = sshll.u32 %s661_s3, 4  ;;  %s56_s8 = int_to_ptr.hbm [resolvable:$true] %s55_s8 }
   0x4   :  { %s33_s28 = sshll.u32 %s582_s27, 4  ;;  %s583_s9 = smov 128   ;;  %s34_s28 = int_to_ptr.vmem [resolvable:$true] %s33_s28 }
   0x5   :  { %s584_s10 = smov 8   ;;  %s585_s11 = smov [#allocation8]  }
   0x6   :  { %39 = dma.hbm_to_vmem [thread:$0]  %s32_s26, 512, %s34_s28, [#allocation6], %s583_s9, %s583_s9, %s584_s10  }
   0x7   :  { %s57_s12 = sshll.u32 %s585_s11, 4  ;;  %s586_s13 = smov 64   ;;  %s58_s12 = int_to_ptr.vmem [resolvable:$true] %s57_s12 }
   0x8   :  { %s587_s14 = smov 4   ;;  %s21_s16 = sshll.u32 %s658_s0, 4  ;;  %s22_s16 = int_to_ptr.hbm [resolvable:$true] %s21_s16 }
   0x9   :  { %63 = dma.hbm_to_vmem [thread:$0]  %s56_s8, 1024, %s58_s12, [#allocation9], %s586_s13, %s586_s13, %s587_s14  }
   0xa   :  { %s588_s17 = smov [#allocation2]   ;;  %s45_s20 = sshll.u32 %s660_s2, 4  ;;  %s46_s20 = int_to_ptr.hbm [resolvable:$true] %s45_s20 }
   0xb   :  { %s23_s18 = sshll.u32 %s588_s17, 4  ;;  %s589_s21 = smov [#allocation7]   ;;  %s24_s18 = int_to_ptr.vmem [resolvable:$true] %s23_s18 }
   0xc   :  { %26 = dma.hbm_to_vmem [thread:$0]  %s22_s16, 128, %s24_s18, [#allocation3]  }
   0xd   :  { %s47_s22 = sshll.u32 %s589_s21, 4  ;;  %s70_s25 = sshll.u32 %s663_s5, 4  ;;  %s48_s22 = int_to_ptr.vmem [resolvable:$true] %s47_s22  ;;  %s71_s25 = int_to_ptr.hbm [resolvable:$true] %s70_s25 }
   0xe   :  { %50 = dma.hbm_to_vmem [thread:$0]  %s46_s20, 16, %s48_s22, [#allocation6]  }
   0xf   :  { %s590_s0 = smov [#allocation10]  }
  0x10   :  { %s72_s26 = sshll.u32 %s590_s0, 4  ;;  %s73_s26 = int_to_ptr.vmem [resolvable:$true] %s72_s26 }
  0x11   :  { %78 = dma.hbm_to_vmem [thread:$0]  %s71_s25, 1024, %s73_s26, [#allocation9], %s586_s13, %s586_s13, %s587_s14  }
  0x12   :  { %574 = dma.done.wait [#allocation3], 128  }
  0x13   :  { %575 = vsyncadd [#allocation3], 4294967168 }
  0x14   :  { %576 = dma.done.wait [#allocation6], 528  }
  0x15   :  { %577 = vsyncadd [#allocation6], 4294966768 }
  0x16   :  { %578 = dma.done.wait [#allocation9], 2048  }
  0x17   :  { %579 = vsyncadd [#allocation9], 4294965248  ;;  %v105_v0 = vld [vmem:[#allocation5 + $0x18] sm:$0xff]  ;;  %v104_v1 = vld [vmem:[#allocation5 + $0x10] sm:$0xff]  ;;  %vm107_vm0 = vcmask 261120   ;;  %s592_s29 = smov [#allocation11]  }
  0x18   :  { %123 = vmatpush.msra.mxu0 %v105_v0  ;;  %v406_v2 = vld [vmem:[#allocation8 + $0x38] sm:$0xff]  ;;  %v103_v3 = vld [vmem:[#allocation5 + $0x8] sm:$0xff]  ;;  %v405_v5 = vld [vmem:[#allocation8 + $0x30] sm:$0xff]  ;;  %v591_v22 = vmov 1.0|1.0   ;;  %s313_s30 = sshll.u32 %s592_s29, 4  ;;  %s314_s30 = int_to_ptr.vmem [resolvable:$true] %s313_s30 }
  0x19   :  { %v102_v4 = vld [vmem:[#allocation5] sm:$0xff]  ;;  %203 = vmatpush.bf16.msra.mxu1 %v406_v2  ;;  %v101_v6 = vld [vmem:[#allocation2] sm:$0xff]  ;;  %v404_v7 = vld [vmem:[#allocation8 + $0x28] sm:$0xff]  ;;  %s315_s10 = sshll.u32 %s665_s7, 4  ;;  %v593_v29 = vmov 0.0   ;;  %s316_s10 = int_to_ptr.hbm [resolvable:$true] %s315_s10 }
  0x1a   :  { %124 = vmatpush.msra.mxu0 %v104_v1  ;;  %v403_v8 = vld [vmem:[#allocation8 + $0x20] sm:$0xff]  ;;  %v402_v9 = vld [vmem:[#allocation8 + $0x18] sm:$0xff]  ;;  %v401_v10 = vld [vmem:[#allocation8 + $0x10] sm:$0xff] }
  0x1b   :  { %v400_v11 = vld [vmem:[#allocation8 + $0x8] sm:$0xff]  ;;  %v399_v12 = vld [vmem:[#allocation8] sm:$0xff]  ;;  %v414_v13 = vld [vmem:[#allocation10 + $0x38] sm:$0xff] }
  0x1c   :  { %125 = vmatpush.msra.mxu0 %v103_v3  ;;  %288 = vmatpush.bf16.msra.mxu2 %v414_v13  ;;  %v413_v14 = vld [vmem:[#allocation10 + $0x30] sm:$0xff]  ;;  %v412_v15 = vld [vmem:[#allocation10 + $0x28] sm:$0xff]  ;;  %v411_v16 = vld [vmem:[#allocation10 + $0x20] sm:$0xff] }
  0x1d   :  { %204 = vmatpush.bf16.msra.mxu1 %v405_v5  ;;  %v410_v17 = vld [vmem:[#allocation10 + $0x18] sm:$0xff]  ;;  %v409_v18 = vld [vmem:[#allocation10 + $0x10] sm:$0xff]  ;;  %v408_v19 = vld [vmem:[#allocation10 + $0x8] sm:$0xff] }
  0x1e   :  { %126 = vmatpush.msra.mxu0 %v102_v4  ;;  %v427_v20 = vld [vmem:[#allocation7] ss:$0 sm:$0xff]  ;;  %v407_v23 = vld [vmem:[#allocation10] sm:$0xff]  ;;  %v428_v24 = vld [vmem:[%s662_s4] ss:$0 sm:$0xff] }
  0x1f   :  { %327 = vmatmul.msk.f32.vlgmr.msra.gmra.mxu0 %vm107_vm0, %v101_v6  ;;  %v429_v27 = vld [vmem:[%s664_s6] ss:$0 sm:$0xff] }
  0x20   :  { %289 = vmatpush.bf16.msra.mxu2 %v413_v14 }
  0x21   :  { %205 = vmatpush.bf16.msra.mxu1 %v404_v7 }
  0x24   :  { %290 = vmatpush.bf16.msra.mxu2 %v412_v15 }
  0x25   :  { %206 = vmatpush.bf16.msra.mxu1 %v403_v8 }
  0x28   :  { %291 = vmatpush.bf16.msra.mxu2 %v411_v16 }
  0x29   :  { %207 = vmatpush.bf16.msra.mxu1 %v402_v9 }
  0x2c   :  { %292 = vmatpush.bf16.msra.mxu2 %v410_v17 }
  0x2d   :  { %208 = vmatpush.bf16.msra.mxu1 %v401_v10 }
  0x30   :  { %293 = vmatpush.bf16.msra.mxu2 %v409_v18 }
  0x31   :  { %209 = vmatpush.bf16.msra.mxu1 %v400_v11 }
  0x34   :  { %294 = vmatpush.bf16.msra.mxu2 %v408_v19 }
  0x35   :  { %210 = vmatpush.bf16.msra.mxu1 %v399_v12 }
  0x38   :  { %295 = vmatpush.bf16.msra.mxu2 %v407_v23 }
  0x9c   :  { %v128_v21 = vpop.f32.mrf.mxu0 }
  0x9d   :  { %vm134_vm1 = vcmp.gt.f32.partialorder %v128_v21, %v427_v20 }
  0x9e   :  { %vm361_vm2 = vmpackc.low %vm134_vm1, %vm134_vm1 }
  0x9f   :  { %362 = vmatmul.msk.bf16.vlgmr.msra.gmra.mxu1 %vm361_vm2, %v591_v22 }
 0x11c   :  { %v212_v25 = vpop.f32.mrf.mxu1 }
 0x11d   :  { %vm219_vm3 = vcmp.gt.f32.partialorder %v212_v25, %v428_v24 }
 0x11e   :  { %vm396_vm4 = vmpackc.low %vm219_vm3, %vm219_vm3 }
 0x11f   :  { %397 = vmatmul.msk.bf16.vlgmr.msra.gmra.mxu2 %vm396_vm4, %v591_v22 }
 0x124   :  { %v214_v26 = vpop.f32.mrf.mxu1 }
 0x1a2   :  { %v297_v28 = vpop.f32.mrf.mxu2 }
 0x1a3   :  { %vm304_vm5 = vcmp.gt.f32.partialorder %v297_v28, %v429_v27 }
 0x1a4   :  { %v398_v30 = vsel %vm304_vm5, 1.0, %v593_v29 }
 0x1a5   :  { %307 = vst [vmem:[#allocation11] sm:$0xff] %v398_v30 }
 0x1a6   :  { %318 = dma.vmem_to_hbm [thread:$0]  %s314_s30, 128, %s316_s10, [#allocation4]  }
 0x1aa   :  { %v299_v31 = vpop.f32.mrf.mxu2 }
 0x1ab   :  { %580 = dma.done.wait [#allocation4], 128  }
 0x1ac   :  { %581 = vsyncadd [#allocation4], 4294967168 }
 0x1ad   :  { %323 = vsyncpa [#allocation3], 1 }
 0x1ae   :  { %324 = vsyncpa [#allocation6], 1 }
 0x1af   :  { %325 = vsyncpa [#allocation9], 1 }
 0x1b0   :  { %326 = vsyncpa [#allocation4], 1 }

</bundles_post_ra>
